<compile_context>
chip_gen: v5e
topology: v5e:2x2
jax: 0.10.0
libtpu: 0.0.40
codegen_flags: <defaults>
</compile_context>

<pallas_src>
import jax
import jax.numpy as jnp
from jax.experimental import pallas as pl
from jax.experimental.pallas import tpu as pltpu


def _round_up(a, m):
    return ((a + m - 1) // m) * m


def decoder_kernel(x_ref, w_att_ref, w_fc_ref, b_fc_ref, o_ref):
    x = x_ref[...]                                   # [TB, N, D]
    if x.dtype != jnp.float32:
        x = x.astype(jnp.float32)
    w_att = w_att_ref[...]                           # [1, D]
    if w_att.dtype != jnp.float32:
        w_att = w_att.astype(jnp.float32)
    w_fc = w_fc_ref[...]                             # [1, D]
    if w_fc.dtype != jnp.float32:
        w_fc = w_fc.astype(jnp.float32)
    b_fc = b_fc_ref[0]                               # scalar from SMEM

    # Single pass over x: per-capsule dot products with both weight vectors.
    #   logits[b,n] = <x[b,n,:], w_att>   (attention bias omitted: softmax
    #                                      over n is shift-invariant)
    #   fcl[b,n]    = <x[b,n,:], w_fc>
    logits = jnp.sum(x * w_att[None, :, :], axis=-1)           # [TB, N]
    fcl = jnp.sum(x * w_fc[None, :, :], axis=-1)               # [TB, N]

    # Softmax over the capsule axis (PyTorch dim=1), then fc — using
    #   w_fc . (sum_n attn_n * x_n)  =  sum_n attn_n * (w_fc . x_n)
    # so the pooled [TB, D] intermediate never materializes.
    m = jnp.max(logits, axis=1, keepdims=True)                  # [TB, 1]
    e = jnp.exp(logits - m)                                     # [TB, N]
    denom = jnp.sum(e, axis=1, keepdims=True)                   # [TB, 1]
    num = jnp.sum(e * fcl, axis=1, keepdims=True)               # [TB, 1]
    out_logit = num / denom + b_fc                              # [TB, 1]

    # Numerically stable, exact sigmoid.
    z = jnp.exp(-jnp.abs(out_logit))                            # in (0, 1]
    sig = jnp.where(out_logit >= 0, 1.0 / (1.0 + z), z / (1.0 + z))
    o_ref[...] = sig.astype(o_ref.dtype)


def decoder_forward(x, w_att, b_att, w_fc, b_fc):
    B, N, D = x.shape
    del b_att  # exact no-op under softmax over the capsule axis

    # ---- VMEM budget (per chip generation) --------------------------------
    try:
        vmem_cap = int(pltpu.get_tpu_info().vmem_capacity_bytes)
    except Exception:
        vmem_cap = 64 << 20                      # conservative (v7x physical)
    vmem_limit = int(min((vmem_cap * 3) // 4, 96 << 20))   # 48 MiB v7x / 96 MiB v5e,v6e
    tile_budget = vmem_limit // 2                # keep 2x headroom below the limit

    # ---- per-batch-row VMEM footprint (padded layout, upcast-aware) -------
    itemsize = jnp.dtype(x.dtype).itemsize
    Np = _round_up(N, 8)                         # sublane padding of the x block
    Dp = _round_up(D, 128)                       # lane padding of the x block
    row_in = Np * Dp * itemsize                  # one batch row of x in VMEM
    row_f32 = Np * Dp * 4 if x.dtype != jnp.float32 else 0   # in-kernel upcast copy
    row_work = 5 * _round_up(N, 128) * 4         # [TB, N] f32 intermediates
    row_out = 2 * 128 * 4 // 8                   # (TB, 1) out block, double-buffered
    row_bytes = 2 * row_in + row_f32 + row_work + row_out

    rows_fit = max(8, int(tile_budget // row_bytes))

    # ---- batch tile: VMEM-fitting, sublane-aligned, and >= ~4 grid steps --
    if rows_fit >= B and B < 32:
        TB = B                                   # tiny batch: one resident tile
    else:
        tb_fit = max(8, (min(rows_fit, B) // 8) * 8)     # fits in VMEM budget
        tb_steps = max(8, (pl.cdiv(B, 4) // 8) * 8)      # keep >= ~4 grid steps
        TB = min(tb_fit, tb_steps)
    TB = min(TB, B)
    grid = (pl.cdiv(B, TB),)

    b_fc_s = jnp.asarray(b_fc, jnp.float32).reshape(1)

    return pl.pallas_call(
        decoder_kernel,
        out_shape=jax.ShapeDtypeStruct((B, 1), x.dtype),
        grid=grid,
        in_specs=[
            pl.BlockSpec((TB, N, D), lambda i: (i, 0, 0)),   # last 2 dims = full dims
            pl.BlockSpec((1, D), lambda i: (0, 0)),
            pl.BlockSpec((1, D), lambda i: (0, 0)),
            pl.BlockSpec(memory_space=pltpu.MemorySpace.SMEM),
        ],
        out_specs=pl.BlockSpec((TB, 1), lambda i: (i, 0)),
        compiler_params=pltpu.CompilerParams(
            dimension_semantics=("parallel",),
            vmem_limit_bytes=vmem_limit,
        ),
    )(x, w_att, w_fc, b_fc_s)


def decoder_reference(x, w_att, b_att, w_fc, b_fc):
    # Pure-JAX reference mirroring the PyTorch forward (biases included).
    logits = jnp.einsum("bnd,od->bno", x, w_att) + b_att[0]   # [B, N, 1]
    attn = jax.nn.softmax(logits, axis=1)                     # softmax over dim=1
    pooled = jnp.sum(x * attn, axis=1)                        # [B, D]
    out = jnp.einsum("bd,od->bo", pooled, w_fc) + b_fc[0]     # [B, 1]
    return jax.nn.sigmoid(out)


if __name__ == "__main__":
    key = jax.random.PRNGKey(0)
    B, N, D = 2, 8, 32   # batch, num_capsules, output_caps

    k_x, k_wa, k_ba, k_wf, k_bf = jax.random.split(key, 5)
    x = jax.random.normal(k_x, (B, N, D), dtype=jnp.float32)

    # PyTorch Linear parameter shapes: weight [1, D], bias [1].
    bound = 1.0 / (D ** 0.5)
    w_att = jax.random.uniform(k_wa, (1, D), jnp.float32, -bound, bound)
    b_att = jax.random.uniform(k_ba, (1,), jnp.float32, -bound, bound)
    w_fc = jax.random.uniform(k_wf, (1, D), jnp.float32, -bound, bound)
    b_fc = jax.random.uniform(k_bf, (1,), jnp.float32, -bound, bound)

    out = decoder_forward(x, w_att, b_att, w_fc, b_fc)
    out = jax.block_until_ready(out)

    ref = decoder_reference(x, w_att, b_att, w_fc, b_fc)
    ref = jax.block_until_ready(ref)

    assert out.shape == (B, 1), out.shape
    assert jnp.allclose(out, ref, atol=1e-5, rtol=1e-5), (out, ref)
    print("KERNEL_OK")
</pallas_src>

<mosaic_0001>
module attributes {stable_mosaic.version = 11 : i64} {
  func.func @decoder_kernel(%arg0: i32, %arg1: memref<2x8x32xf32, #tpu.memory_space<vmem>>, %arg2: memref<1x32xf32, #tpu.memory_space<vmem>>, %arg3: memref<1x32xf32, #tpu.memory_space<vmem>>, %arg4: memref<1xf32, #tpu.memory_space<smem>>, %arg5: memref<2x1xf32, #tpu.memory_space<vmem>>) attributes {dimension_semantics = [#tpu.dimension_semantics<parallel>], iteration_bounds = array<i64: 1>, scalar_prefetch = 0 : i64, scratch_operands = 0 : i64, tpu.core_type = #tpu.core_type<tc>, window_params = [{transform_indices = @transform_0, window_bounds = array<i64: 2, 8, 32>}, {pipeline_mode = #tpu.pipeline_mode<synchronous>, transform_indices = @transform_1, window_bounds = array<i64: 1, 32>}, {pipeline_mode = #tpu.pipeline_mode<synchronous>, transform_indices = @transform_2, window_bounds = array<i64: 1, 32>}, {transform_indices = @transform_3, window_bounds = array<i64: 1>}, {transform_indices = @transform_4, window_bounds = array<i64: 2, 1>}]} {
    %c0 = arith.constant 0 : index
    %c0_0 = arith.constant 0 : index
    %c0_1 = arith.constant 0 : index
    %0 = vector.load %arg1[%c0, %c0_0, %c0_1] : memref<2x8x32xf32, #tpu.memory_space<vmem>>, vector<2x8x32xf32>
    %c0_2 = arith.constant 0 : index
    %c0_3 = arith.constant 0 : index
    %1 = vector.load %arg2[%c0_2, %c0_3] : memref<1x32xf32, #tpu.memory_space<vmem>>, vector<1x32xf32>
    %c0_4 = arith.constant 0 : index
    %c0_5 = arith.constant 0 : index
    %2 = vector.load %arg3[%c0_4, %c0_5] : memref<1x32xf32, #tpu.memory_space<vmem>>, vector<1x32xf32>
    %c0_6 = arith.constant 0 : index
    %3 = memref.load %arg4[%c0_6] : memref<1xf32, #tpu.memory_space<smem>>
    %4 = vector.shape_cast %1 : vector<1x32xf32> to vector<1x1x32xf32>
    %5 = vector.broadcast %4 : vector<1x1x32xf32> to vector<2x8x32xf32>
    %6 = arith.mulf %0, %5 : vector<2x8x32xf32>
    %cst = arith.constant dense<0.000000e+00> : vector<2x8xf32>
    %7 = vector.multi_reduction <add>, %6, %cst [2] : vector<2x8x32xf32> to vector<2x8xf32>
    %8 = vector.shape_cast %2 : vector<1x32xf32> to vector<1x1x32xf32>
    %9 = vector.broadcast %8 : vector<1x1x32xf32> to vector<2x8x32xf32>
    %10 = arith.mulf %0, %9 : vector<2x8x32xf32>
    %cst_7 = arith.constant dense<0.000000e+00> : vector<2x8xf32>
    %11 = vector.multi_reduction <add>, %10, %cst_7 [2] : vector<2x8x32xf32> to vector<2x8xf32>
    %cst_8 = arith.constant dense<0xFF800000> : vector<2xf32>
    %12 = vector.multi_reduction <maximumf>, %7, %cst_8 [1] : vector<2x8xf32> to vector<2xf32>
    %13 = vector.shape_cast %12 : vector<2xf32> to vector<2x1xf32>
    %14 = vector.broadcast %13 : vector<2x1xf32> to vector<2x8xf32>
    %15 = arith.subf %7, %14 : vector<2x8xf32>
    %16 = math.exp %15 : vector<2x8xf32>
    %cst_9 = arith.constant dense<0.000000e+00> : vector<2xf32>
    %17 = vector.multi_reduction <add>, %16, %cst_9 [1] : vector<2x8xf32> to vector<2xf32>
    %18 = vector.shape_cast %17 : vector<2xf32> to vector<2x1xf32>
    %19 = arith.mulf %16, %11 : vector<2x8xf32>
    %cst_10 = arith.constant dense<0.000000e+00> : vector<2xf32>
    %20 = vector.multi_reduction <add>, %19, %cst_10 [1] : vector<2x8xf32> to vector<2xf32>
    %21 = vector.shape_cast %20 : vector<2xf32> to vector<2x1xf32>
    %22 = arith.divf %21, %18 : vector<2x1xf32>
    %23 = vector.broadcast %3 : f32 to vector<2x1xf32>
    %24 = arith.addf %22, %23 : vector<2x1xf32>
    %25 = math.absf %24 : vector<2x1xf32>
    %cst_11 = arith.constant 0.000000e+00 : f32
    %26 = vector.broadcast %cst_11 : f32 to vector<2x1xf32>
    %27 = arith.subf %26, %25 : vector<2x1xf32>
    %28 = math.exp %27 : vector<2x1xf32>
    %cst_12 = arith.constant 0.000000e+00 : f32
    %29 = vector.broadcast %cst_12 : f32 to vector<2x1xf32>
    %30 = arith.cmpf oge, %24, %29 : vector<2x1xf32>
    %cst_13 = arith.constant 1.000000e+00 : f32
    %31 = vector.broadcast %cst_13 : f32 to vector<2x1xf32>
    %32 = arith.addf %31, %28 : vector<2x1xf32>
    %cst_14 = arith.constant 1.000000e+00 : f32
    %33 = vector.broadcast %cst_14 : f32 to vector<2x1xf32>
    %34 = arith.divf %33, %32 : vector<2x1xf32>
    %cst_15 = arith.constant 1.000000e+00 : f32
    %35 = vector.broadcast %cst_15 : f32 to vector<2x1xf32>
    %36 = arith.addf %35, %28 : vector<2x1xf32>
    %37 = arith.divf %28, %36 : vector<2x1xf32>
    %38 = arith.select %30, %34, %37 : vector<2x1xi1>, vector<2x1xf32>
    %c0_16 = arith.constant 0 : index
    %c0_17 = arith.constant 0 : index
    %39 = vector.load %arg5[%c0_16, %c0_17] : memref<2x1xf32, #tpu.memory_space<vmem>>, vector<2x1xf32>
    tpu.vector_store %arg5[%c0_16, %c0_17], %38 {strides = array<i32>} : memref<2x1xf32, #tpu.memory_space<vmem>>, vector<2x1xf32>,
    return
  }
  func.func @transform_0(%arg0: i32) -> (i32, i32, i32) {
    %c0_i32 = arith.constant 0 : i32
    %c0_i32_0 = arith.constant 0 : i32
    %c0_i32_1 = arith.constant 0 : i32
    return %arg0, %c0_i32, %c0_i32_0 : i32, i32, i32
  }
  func.func @transform_1(%arg0: i32) -> (i32, i32) {
    %c0_i32 = arith.constant 0 : i32
    %c0_i32_0 = arith.constant 0 : i32
    %c0_i32_1 = arith.constant 0 : i32
    return %c0_i32, %c0_i32_0 : i32, i32
  }
  func.func @transform_2(%arg0: i32) -> (i32, i32) {
    %c0_i32 = arith.constant 0 : i32
    %c0_i32_0 = arith.constant 0 : i32
    %c0_i32_1 = arith.constant 0 : i32
    return %c0_i32, %c0_i32_0 : i32, i32
  }
  func.func @transform_3(%arg0: i32) -> i32 {
    %c0_i32 = arith.constant 0 : i32
    %c0_i32_0 = arith.constant 0 : i32
    return %c0_i32 : i32
  }
  func.func @transform_4(%arg0: i32) -> (i32, i32) {
    %c0_i32 = arith.constant 0 : i32
    %c0_i32_0 = arith.constant 0 : i32
    return %arg0, %c0_i32 : i32, i32
  }
}

</mosaic_0001>

<bundles_post_ra>
// kernel: tpu_custom_call.1
= control target key start
LH: loop header
LB: loop body
LE: loop exit
PB: predicated region body
PF: predicated region fallthrough
CT: control target
= control target key end

     0   :  { %10 = vsyncpa [#allocation4], 0  ;;  %s210_s18 = smov [#allocation3]   ;;  %s211_s20 = smov 128   ;;  %s264_s0 = inlined_call_operand.hbm [shape: f32[2,8,32], index: 0, kind: input, shape index: {}]   ;;  %s265_s1 = inlined_call_operand.vmem [shape: f32[1,32], index: 1, kind: input, shape index: {}]   ;;  %s266_s2 = inlined_call_operand.vmem [shape: f32[1,32], index: 2, kind: input, shape index: {}]   ;;  %s267_s3 = inlined_call_operand.<no memory space> [shape: f32[1], index: 3, kind: input, shape index: {}]   ;;  %s268_s4 = inlined_call_operand.vmem [shape: f32[2,1], index: 4, kind: output, shape index: {}]  }
   0x1   :  { %s15_s17 = sshll.u32 %s264_s0, 4  ;;  %s17_s19 = sshll.u32 %s210_s18, 4  ;;  %s16_s17 = int_to_ptr.hbm [resolvable:$true] %s15_s17  ;;  %s18_s19 = int_to_ptr.vmem [resolvable:$true] %s17_s19 }
   0x2   :  { %s212_s21 = smov 8  }
   0x3   :  { %23 = dma.hbm_to_vmem [thread:$0]  %s16_s17, 256, %s18_s19, [#allocation4], %s211_s20, %s211_s20, %s212_s21  }
   0x4   :  { %208 = dma.done.wait [#allocation4], 256  }
   0x5   :  { %209 = vsyncadd [#allocation4], 4294967040  ;;  %v34_v0 = vld [vmem:[#allocation3] sm:$0xff]  ;;  %vm44_vm0 = vcmask 261120   ;;  %v35_v3 = vld [vmem:[#allocation3 + $0x8] sm:$0xff]  ;;  %v64_v11 = vlaneseq  ;;  %vm68_vm1 = vcmask 1041409   ;;  %v133_v57 = vstv %s267_s3 }
   0x6   :  { %v172_v1 = vld [vmem:[%s265_s1] ss:$0 sm:$0xff]  ;;  %vm71_vm2 = vcmask 58368   ;;  %v213_v20 = vmov 0   ;;  %vm158_vm11 = vcmask 1024  }
   0x7   :  { %v42_v2 = vmul.f32 %v172_v1, %v34_v0  ;;  %v43_v5 = vmul.f32 %v172_v1, %v35_v3  ;;  %v173_v7 = vld [vmem:[%s266_s2] ss:$0 sm:$0xff]  ;;  %v65_v12 = vand.u32 127, %v64_v11  ;;  %170 = vset.pattern.permute.xlu0 %v213_v20  ;;  %169 = vset.pattern.permute.xlu2 %v213_v20 }
   0x8   :  { %v55_v8 = vmul.f32 %v173_v7, %v35_v3  ;;  %v54_v18 = vmul.f32 %v173_v7, %v34_v0  ;;  %171 = vset.pattern.permute.xlu1 %v213_v20 }
   0x9   :  { %v45_v4 = vsel %vm44_vm0, %v42_v2, 0.0  ;;  %v48_v6 = vsel %vm44_vm0, %v43_v5, 0.0 }
   0xa   :  { %46 = vadd.xlane.f32.xlu0 %v45_v4  ;;  %v59_v9 = vsel %vm44_vm0, %v55_v8, 0.0  ;;  %v56_v19 = vsel %vm44_vm0, %v54_v18, 0.0 }
   0xb   :  { %60 = vadd.xlane.f32.xlu2 %v59_v9 }
  0x12   :  { %49 = vadd.xlane.f32.xlu0 %v48_v6 }
  0x7d   :  { %v47_v10 = vpop.xlane.xlu0 %46 }
  0x7e   :  { %v66_v14 = vperm.slane %v47_v10, %v65_v12  ;;  %v61_v32 = vpop.xlane.xlu2 %60 }
  0x85   :  { %v50_v13 = vpop.xlane.xlu0 %49 }
  0x86   :  { %v67_v15 = vperm.slane %v50_v13, %v65_v12 }
  0x88   :  { %v69_v16 = vsel %vm68_vm1, %v67_v15, %v66_v14 }
  0x89   :  { %v72_v17 = vsel %vm71_vm2, %v69_v16, -inf }
  0x8a   :  { %73 = vmax.xlane.f32.xlu1 %v72_v17 }
  0x92   :  { %57 = vadd.xlane.f32.xlu1 %v56_v19 }
  0xfd   :  { %v74_v21 = vpop.xlane.xlu1 %73 }
  0xfe   :  { %v76_v22 = vperm.slane %v74_v21, 0  ;;  %v77_v23 = vperm.slane %v74_v21, 1 }
 0x100   :  { %v80_v24 = vsub.f32 %v47_v10, %v76_v22  ;;  %v81_v25 = vsub.f32 %v50_v13, %v77_v23 }
 0x102   :  { %v82_v26 = vmul.f32 1.442695, %v80_v24  ;;  %v84_v27 = vmul.f32 1.442695, %v81_v25 }
 0x104   :  { %174 = vpow2.f32 %v82_v26 }
 0x105   :  { %176 = vpow2.f32 %v84_v27  ;;  %v58_v28 = vpop.xlane.xlu1 %57 }
 0x10a   :  { %v175_v29 = vpop.eup %174 }
 0x10b   :  { %v177_v30 = vpop.eup %176  ;;  %v101_v31 = vmul.f32 %v175_v29, %v58_v28  ;;  %89 = vperm.xlu2 %169, %v175_v29  }
 0x10c   :  { %92 = vperm.xlu0 %170, %v177_v30   ;;  %v102_v33 = vmul.f32 %v177_v30, %v61_v32 }
 0x10d   :  { %106 = vperm.xlu1 %171, %v101_v31  }
 0x113   :  { %109 = vperm.xlu2 %169, %v102_v33  }
 0x165   :  { %v90_v34 = vpop.permute.xlu2 %89 }
 0x166   :  { %v94_v37 = vperm.slane %v90_v34, %v65_v12 }
 0x16d   :  { %v110_v35 = vpop.permute.xlu2 %109 }
 0x16e   :  { %v112_v40 = vperm.slane %v110_v35, %v65_v12 }
 0x17e   :  { %v93_v36 = vpop.permute.xlu0 %92 }
 0x17f   :  { %v95_v38 = vperm.slane %v93_v36, %v65_v12  ;;  %v107_v39 = vpop.permute.xlu1 %106 }
 0x180   :  { %v111_v41 = vperm.slane %v107_v39, %v65_v12 }
 0x181   :  { %v96_v42 = vsel %vm68_vm1, %v95_v38, %v94_v37 }
 0x182   :  { %v98_v43 = vsel %vm71_vm2, %v96_v42, 0.0  ;;  %v113_v44 = vsel %vm68_vm1, %v112_v40, %v111_v41 }
 0x183   :  { %99 = vadd.xlane.f32.xlu2 %v98_v43  ;;  %v115_v45 = vsel %vm71_vm2, %v113_v44, 0.0 }
 0x184   :  { %116 = vadd.xlane.f32.xlu1 %v115_v45 }
 0x1f6   :  { %v100_v46 = vpop.xlane.xlu2 %99 }
 0x1f7   :  { %178 = vrcp.f32 %v100_v46  ;;  %v129_v50 = vand.u32 2147483648, %v100_v46  ;;  %v127_v52 = vand.u32 2147483647, %v100_v46  ;;  %vm123_vm4 = vweird.f32 %v100_v46  ;;  %v117_v58 = vpop.xlane.xlu1 %116 }
 0x1f9   :  { %v130_v54 = vor.u32 1.1754944e-38, %v129_v50  ;;  %vm128_vm6 = vcmp.eq.f32.partialorder %v127_v52, 8.507059e+37 }
 0x1fd   :  { %v179_v47 = vpop.eup %178 }
 0x1fe   :  { %v119_v48 = vmul.f32 %v179_v47, %v100_v46  ;;  %vm124_vm3 = vweird.f32 %v179_v47 }
 0x1ff   :  { %vm125_vm5 = vmor %vm123_vm4, %vm124_vm3 }
 0x200   :  { %v120_v49 = vsub.f32 1.0, %v119_v48 }
 0x202   :  { %v121_v51 = vmul.f32 %v179_v47, %v120_v49 }
 0x204   :  { %v122_v53 = vadd.f32 %v179_v47, %v121_v51 }
 0x206   :  { %v126_v55 = vsel %vm125_vm5, %v179_v47, %v122_v53 }
 0x207   :  { %v131_v56 = vsel %vm128_vm6, %v130_v54, %v126_v55 }
 0x208   :  { %v132_v59 = vmul.f32 %v131_v56, %v117_v58 }
 0x20a   :  { %v134_v60 = vadd.f32 %v133_v57, %v132_v59 }
 0x20c   :  { %v135_v61 = vand.u32 2147483647, %v134_v60  ;;  %vm139_vm12 = vcmp.ge.f32.partialorder %v134_v60, 0.0 }
 0x20e   :  { %v136_v62 = vsub.f32 0.0, %v135_v61 }
 0x210   :  { %v137_v63 = vmul.f32 1.442695, %v136_v62 }
 0x212   :  { %180 = vpow2.f32 %v137_v63 }
 0x218   :  { %v181_v0 = vpop.eup %180 }
 0x219   :  { %v140_v1 = vadd.f32 1.0, %v181_v0 }
 0x21b   :  { %182 = vrcp.f32 %v140_v1  ;;  %v152_v5 = vand.u32 2147483648, %v140_v1  ;;  %v150_v7 = vand.u32 2147483647, %v140_v1  ;;  %vm146_vm8 = vweird.f32 %v140_v1 }
 0x21d   :  { %v153_v9 = vor.u32 1.1754944e-38, %v152_v5  ;;  %vm151_vm10 = vcmp.eq.f32.partialorder %v150_v7, 8.507059e+37 }
 0x221   :  { %v183_v2 = vpop.eup %182 }
 0x222   :  { %v142_v3 = vmul.f32 %v183_v2, %v140_v1  ;;  %vm147_vm7 = vweird.f32 %v183_v2 }
 0x223   :  { %vm148_vm9 = vmor %vm146_vm8, %vm147_vm7 }
 0x224   :  { %v143_v4 = vsub.f32 1.0, %v142_v3 }
 0x226   :  { %v144_v6 = vmul.f32 %v183_v2, %v143_v4 }
 0x228   :  { %v145_v8 = vadd.f32 %v183_v2, %v144_v6 }
 0x22a   :  { %v149_v10 = vsel %vm148_vm9, %v183_v2, %v145_v8 }
 0x22b   :  { %v154_v11 = vsel %vm151_vm10, %v153_v9, %v149_v10 }
 0x22c   :  { %v156_v12 = vmul.f32 %v181_v0, %v154_v11 }
 0x22e   :  { %v157_v13 = vsel %vm139_vm12, %v154_v11, %v156_v12 }
 0x22f   :  { %159 = vst.msk [vmem:[%s268_s4] sm:$0x3] %vm158_vm11, %v157_v13 }
 0x230   :  { %164 = vsyncpa [#allocation4], 1 }

</bundles_post_ra>
